<compile_context>
chip_gen: v7x
topology: tpu7x:2x2x1
jax: 0.10.0
libtpu: 0.0.40
codegen_flags: <defaults>
</compile_context>

<pallas_src>
import numpy as np
import jax
import jax.numpy as jnp
from jax.experimental import pallas as pl
from jax.experimental.pallas import tpu as pltpu


# ----------------------------- Kernel ----------------------------------------
def _make_cbam_kernel(B, C, HW):
    def kernel(x_ref, w1_ref, b1_ref, w2_ref, b2_ref, tconv_ref,
               gamma_ref, beta_ref, out_ref):
        f32 = jnp.float32
        x = x_ref[...].astype(f32)                       # (B, C, HW), lane-dense

        # ---------------- ChannelGate ----------------------------------------
        avg = jnp.mean(x, axis=2)                        # (B, C)  == avg_pool2d
        mx = jnp.max(x, axis=2)                          # (B, C)  == max_pool2d
        stats = jnp.concatenate([avg, mx], axis=0)       # (2B, C): one fused dot
        h = jnp.maximum(
            jnp.dot(stats, w1_ref[...], preferred_element_type=f32)
            + b1_ref[...], 0.0)                          # (2B, Ch)
        h_sum = h[:B] + h[B:]                            # ReLU(avg) + ReLU(max)
        # mlp(avg) + mlp(max) == (relu_a + relu_m) @ w2 + 2*b2  (shared Linear)
        att = jnp.dot(h_sum, w2_ref[...], preferred_element_type=f32) \
            + 2.0 * b2_ref[...]
        ch_scale = jax.nn.sigmoid(att)                   # (B, C)
        y = x * ch_scale[:, :, None]                     # (B, C, HW), stays in vregs

        # ---------------- ChannelPool -----------------------------------------
        cmax = jnp.max(y, axis=1)                        # (B, HW)
        cmean = jnp.mean(y, axis=1)                      # (B, HW)
        comp = jnp.concatenate([cmax, cmean], axis=1)    # (B, 2*HW)

        # ---------------- 7x7 (2 -> 1) conv as a block-Toeplitz MXU matmul ----
        conv = jnp.dot(comp, tconv_ref[...],
                       preferred_element_type=f32)       # (B, HW)

        # ---------------- BatchNorm2d(1), training mode -----------------------
        mean = jnp.mean(conv, keepdims=True)             # (1, 1)
        var = jnp.mean((conv - mean) ** 2, keepdims=True)  # biased variance
        bn = (conv - mean) * jax.lax.rsqrt(var + 1e-5)
        bn = bn * gamma_ref[0] + beta_ref[0]

        # ---------------- SpatialGate multiply: single output write -----------
        sp_scale = jax.nn.sigmoid(bn)                    # (B, HW)
        out_ref[...] = (y * sp_scale[:, None, :]).astype(out_ref.dtype)

    return kernel


# ---------------- Block-Toeplitz expansion of the 7x7 (2->1) conv -------------
def build_conv_toeplitz(wconv, H, W, K=7):
    """T[(c*HW + p_in), p_out] = wconv[c, kh, kw] whenever input position p_in
    is the (kh, kw) tap of output position p_out (zero padding=3)."""
    P = (K - 1) // 2
    HW = H * W
    io, jo = np.meshgrid(np.arange(H), np.arange(W), indexing="ij")
    rows, cols, widx = [], [], []
    for c in range(2):
        for kh in range(K):
            for kw in range(K):
                ii = io + kh - P
                jj = jo + kw - P
                valid = (ii >= 0) & (ii < H) & (jj >= 0) & (jj < W)
                rows.append((c * HW + ii * W + jj)[valid])
                cols.append((io * W + jo)[valid])
                widx.append(np.full(int(valid.sum()), c * K * K + kh * K + kw))
    rows = np.concatenate(rows)
    cols = np.concatenate(cols)
    widx = np.concatenate(widx)
    T = jnp.zeros((2 * HW, HW), jnp.float32)
    return T.at[rows, cols].set(wconv[widx])


# ----------------------------- Wrapper ----------------------------------------
def cbam_forward(x, params):
    B, C, H, W = x.shape
    HW = H * W

    tconv = build_conv_toeplitz(params["wconv"], H, W)   # (2*HW, HW), ~512 KiB

    vmem = pl.BlockSpec(memory_space=pltpu.MemorySpace.VMEM)
    smem = pl.BlockSpec(memory_space=pltpu.MemorySpace.SMEM)

    cost = pl.CostEstimate(
        flops=2 * B * (2 * HW) * HW + 4 * B * C * HW,
        transcendentals=B * C + B * HW,
        bytes_accessed=2 * B * C * HW * 4 + 2 * HW * HW * 4,
    )

    out_flat = pl.pallas_call(
        _make_cbam_kernel(B, C, HW),
        out_shape=jax.ShapeDtypeStruct((B, C, HW), x.dtype),
        in_specs=[vmem, vmem, vmem, vmem, vmem, vmem, smem, smem],
        out_specs=vmem,
        cost_estimate=cost,
        compiler_params=pltpu.CompilerParams(vmem_limit_bytes=16 * 1024 * 1024),
    )(x.reshape(B, C, HW),
      params["w1"], params["b1"], params["w2"], params["b2"],
      tconv, params["gamma"], params["beta"])
    return out_flat.reshape(B, C, H, W)


# --------------------------- Pure-JAX reference -------------------------------
def cbam_ref(x, p):
    avg = x.mean(axis=(2, 3))
    mx = x.max(axis=(2, 3))

    def mlp(v):
        h = jnp.maximum(v @ p["w1"] + p["b1"], 0.0)
        return h @ p["w2"] + p["b2"]

    scale = jax.nn.sigmoid(mlp(avg) + mlp(mx))
    y = x * scale[:, :, None, None]

    comp = jnp.stack([y.max(axis=1), y.mean(axis=1)], axis=1)        # (B,2,H,W)
    conv = jax.lax.conv_general_dilated(
        comp, p["wconv"].reshape(1, 2, 7, 7),
        window_strides=(1, 1), padding=((3, 3), (3, 3)),
        dimension_numbers=("NCHW", "OIHW", "NCHW"))                  # (B,1,H,W)
    m = conv.mean()
    v = ((conv - m) ** 2).mean()
    bn = (conv - m) * jax.lax.rsqrt(v + 1e-5) * p["gamma"][0] + p["beta"][0]
    return y * jax.nn.sigmoid(bn)


# ---------------------------------- Main --------------------------------------
if __name__ == "__main__":
    B, C, H, W = 2, 32, 16, 16          # gate_channels=32, reduction_ratio=16
    r = 16
    Ch = C // r

    key = jax.random.PRNGKey(0)
    ks = jax.random.split(key, 6)
    x = jax.random.normal(ks[0], (B, C, H, W), jnp.float32)

    params = {
        # MLP weights stored already-transposed for `v @ W` use.
        "w1": 0.2 * jax.random.normal(ks[1], (C, Ch), jnp.float32),
        "b1": 0.1 * jax.random.normal(ks[2], (1, Ch), jnp.float32),
        "w2": 0.2 * jax.random.normal(ks[3], (Ch, C), jnp.float32),
        "b2": 0.1 * jax.random.normal(ks[4], (1, C), jnp.float32),
        # Conv2d(2, 1, 7, padding=3, bias=False) weights, flattened (c, kh, kw).
        "wconv": 0.1 * jax.random.normal(ks[5], (2 * 7 * 7,), jnp.float32),
        # BatchNorm2d(1) affine params (PyTorch default init).
        "gamma": jnp.ones((1,), jnp.float32),
        "beta": jnp.zeros((1,), jnp.float32),
    }

    out = cbam_forward(x, params)
    jax.block_until_ready(out)

    ref = cbam_ref(x, params)
    err = float(jnp.max(jnp.abs(out - ref)))
    assert jnp.allclose(out, ref, atol=2e-3, rtol=2e-3), f"max abs err {err}"

    print("KERNEL_OK")
</pallas_src>

<mosaic_0001>
module attributes {stable_mosaic.version = 11 : i64} {
  func.func @kernel(%arg0: memref<2x32x256xf32, #tpu.memory_space<vmem>>, %arg1: memref<32x2xf32, #tpu.memory_space<vmem>>, %arg2: memref<1x2xf32, #tpu.memory_space<vmem>>, %arg3: memref<2x32xf32, #tpu.memory_space<vmem>>, %arg4: memref<1x32xf32, #tpu.memory_space<vmem>>, %arg5: memref<512x256xf32, #tpu.memory_space<vmem>>, %arg6: memref<1xf32, #tpu.memory_space<smem>>, %arg7: memref<1xf32, #tpu.memory_space<smem>>, %arg8: memref<2x32x256xf32, #tpu.memory_space<vmem>>) attributes {dimension_semantics = [], scalar_prefetch = 0 : i64, scratch_operands = 0 : i64, tpu.core_type = #tpu.core_type<tc>} {
    %c0 = arith.constant 0 : index
    %c0_0 = arith.constant 0 : index
    %c0_1 = arith.constant 0 : index
    %0 = vector.load %arg0[%c0, %c0_0, %c0_1] : memref<2x32x256xf32, #tpu.memory_space<vmem>>, vector<2x32x256xf32>
    %cst = arith.constant dense<0.000000e+00> : vector<2x32xf32>
    %1 = vector.multi_reduction <add>, %0, %cst [2] : vector<2x32x256xf32> to vector<2x32xf32>
    %cst_2 = arith.constant 2.560000e+02 : f32
    %2 = vector.broadcast %cst_2 : f32 to vector<2x32xf32>
    %3 = arith.divf %1, %2 : vector<2x32xf32>
    %cst_3 = arith.constant dense<0xFF800000> : vector<2x32xf32>
    %4 = vector.multi_reduction <maximumf>, %0, %cst_3 [2] : vector<2x32x256xf32> to vector<2x32xf32>
    %5 = tpu.concatenate %3, %4 in 0 : vector<2x32xf32>, vector<2x32xf32> -> vector<4x32xf32>
    %c0_4 = arith.constant 0 : index
    %c0_5 = arith.constant 0 : index
    %6 = vector.load %arg1[%c0_4, %c0_5] : memref<32x2xf32, #tpu.memory_space<vmem>>, vector<32x2xf32>
    %cst_6 = arith.constant dense<0.000000e+00> : vector<4x2xf32>
    %7 = tpu.matmul %5, %6, %cst_6 {dimension_numbers = #tpu.dot_dimension_numbers<[1], [0], [0], [1], [0, 0, 1, 1], [], []>} : vector<4x32xf32>, vector<32x2xf32>, vector<4x2xf32> -> vector<4x2xf32>
    %c0_7 = arith.constant 0 : index
    %c0_8 = arith.constant 0 : index
    %8 = vector.load %arg2[%c0_7, %c0_8] : memref<1x2xf32, #tpu.memory_space<vmem>>, vector<1x2xf32>
    %9 = vector.broadcast %8 : vector<1x2xf32> to vector<4x2xf32>
    %10 = arith.addf %7, %9 : vector<4x2xf32>
    %cst_9 = arith.constant 0.000000e+00 : f32
    %11 = vector.broadcast %cst_9 : f32 to vector<4x2xf32>
    %12 = arith.maximumf %10, %11 : vector<4x2xf32>
    %13 = vector.extract_strided_slice %12 {offsets = [0, 0], sizes = [2, 2], strides = [1, 1]} : vector<4x2xf32> to vector<2x2xf32>
    %14 = vector.extract_strided_slice %12 {offsets = [2, 0], sizes = [2, 2], strides = [1, 1]} : vector<4x2xf32> to vector<2x2xf32>
    %15 = arith.addf %13, %14 : vector<2x2xf32>
    %c0_10 = arith.constant 0 : index
    %c0_11 = arith.constant 0 : index
    %16 = vector.load %arg3[%c0_10, %c0_11] : memref<2x32xf32, #tpu.memory_space<vmem>>, vector<2x32xf32>
    %cst_12 = arith.constant dense<0.000000e+00> : vector<2x32xf32>
    %17 = tpu.matmul %15, %16, %cst_12 {dimension_numbers = #tpu.dot_dimension_numbers<[1], [0], [0], [1], [0, 0, 1, 1], [], []>} : vector<2x2xf32>, vector<2x32xf32>, vector<2x32xf32> -> vector<2x32xf32>
    %c0_13 = arith.constant 0 : index
    %c0_14 = arith.constant 0 : index
    %18 = vector.load %arg4[%c0_13, %c0_14] : memref<1x32xf32, #tpu.memory_space<vmem>>, vector<1x32xf32>
    %cst_15 = arith.constant 2.000000e+00 : f32
    %19 = vector.broadcast %cst_15 : f32 to vector<1x32xf32>
    %20 = arith.mulf %19, %18 : vector<1x32xf32>
    %21 = vector.broadcast %20 : vector<1x32xf32> to vector<2x32xf32>
    %22 = arith.addf %17, %21 : vector<2x32xf32>
    %23 = arith.negf %22 : vector<2x32xf32>
    %24 = math.exp %23 : vector<2x32xf32>
    %cst_16 = arith.constant 1.000000e+00 : f32
    %25 = vector.broadcast %cst_16 : f32 to vector<2x32xf32>
    %26 = arith.addf %25, %24 : vector<2x32xf32>
    %27 = arith.divf %25, %26 : vector<2x32xf32>
    %28 = vector.shape_cast %27 : vector<2x32xf32> to vector<2x32x1xf32>
    %29 = vector.broadcast %28 : vector<2x32x1xf32> to vector<2x32x256xf32>
    %30 = arith.mulf %0, %29 : vector<2x32x256xf32>
    %cst_17 = arith.constant dense<0xFF800000> : vector<2x256xf32>
    %31 = vector.multi_reduction <maximumf>, %30, %cst_17 [1] : vector<2x32x256xf32> to vector<2x256xf32>
    %cst_18 = arith.constant dense<0.000000e+00> : vector<2x256xf32>
    %32 = vector.multi_reduction <add>, %30, %cst_18 [1] : vector<2x32x256xf32> to vector<2x256xf32>
    %cst_19 = arith.constant 3.200000e+01 : f32
    %33 = vector.broadcast %cst_19 : f32 to vector<2x256xf32>
    %34 = arith.divf %32, %33 : vector<2x256xf32>
    %35 = tpu.concatenate %31, %34 in 1 : vector<2x256xf32>, vector<2x256xf32> -> vector<2x512xf32>
    %c0_20 = arith.constant 0 : index
    %c0_21 = arith.constant 0 : index
    %36 = vector.load %arg5[%c0_20, %c0_21] : memref<512x256xf32, #tpu.memory_space<vmem>>, vector<512x256xf32>
    %cst_22 = arith.constant dense<0.000000e+00> : vector<2x256xf32>
    %37 = tpu.matmul %35, %36, %cst_22 {dimension_numbers = #tpu.dot_dimension_numbers<[1], [0], [0], [1], [0, 0, 1, 1], [], []>} : vector<2x512xf32>, vector<512x256xf32>, vector<2x256xf32> -> vector<2x256xf32>
    %38 = vector.shape_cast %37 : vector<2x256xf32> to vector<1x2x256xf32>
    %cst_23 = arith.constant dense<0.000000e+00> : vector<1xf32>
    %39 = vector.multi_reduction <add>, %38, %cst_23 [1, 2] : vector<1x2x256xf32> to vector<1xf32>
    %40 = vector.shape_cast %39 : vector<1xf32> to vector<1x1x1xf32>
    %41 = vector.extract %40[0, 0, 0] : f32 from vector<1x1x1xf32>
    %42 = vector.broadcast %41 : f32 to vector<1x1xf32>
    %cst_24 = arith.constant 5.120000e+02 : f32
    %43 = vector.broadcast %cst_24 : f32 to vector<1x1xf32>
    %44 = arith.divf %42, %43 : vector<1x1xf32>
    %45 = vector.broadcast %44 : vector<1x1xf32> to vector<2x256xf32>
    %46 = arith.subf %37, %45 : vector<2x256xf32>
    %47 = arith.mulf %46, %46 : vector<2x256xf32>
    %48 = vector.shape_cast %47 : vector<2x256xf32> to vector<1x2x256xf32>
    %cst_25 = arith.constant dense<0.000000e+00> : vector<1xf32>
    %49 = vector.multi_reduction <add>, %48, %cst_25 [1, 2] : vector<1x2x256xf32> to vector<1xf32>
    %50 = vector.shape_cast %49 : vector<1xf32> to vector<1x1x1xf32>
    %51 = vector.extract %50[0, 0, 0] : f32 from vector<1x1x1xf32>
    %52 = vector.broadcast %51 : f32 to vector<1x1xf32>
    %cst_26 = arith.constant 5.120000e+02 : f32
    %53 = vector.broadcast %cst_26 : f32 to vector<1x1xf32>
    %54 = arith.divf %52, %53 : vector<1x1xf32>
    %55 = vector.broadcast %44 : vector<1x1xf32> to vector<2x256xf32>
    %56 = arith.subf %37, %55 : vector<2x256xf32>
    %cst_27 = arith.constant 9.99999974E-6 : f32
    %57 = vector.broadcast %cst_27 : f32 to vector<1x1xf32>
    %58 = arith.addf %54, %57 : vector<1x1xf32>
    %59 = math.rsqrt %58 : vector<1x1xf32>
    %60 = vector.broadcast %59 : vector<1x1xf32> to vector<2x256xf32>
    %61 = arith.mulf %56, %60 : vector<2x256xf32>
    %c0_28 = arith.constant 0 : index
    %62 = memref.load %arg6[%c0_28] : memref<1xf32, #tpu.memory_space<smem>>
    %63 = vector.broadcast %62 : f32 to vector<2x256xf32>
    %64 = arith.mulf %61, %63 : vector<2x256xf32>
    %c0_29 = arith.constant 0 : index
    %65 = memref.load %arg7[%c0_29] : memref<1xf32, #tpu.memory_space<smem>>
    %66 = vector.broadcast %65 : f32 to vector<2x256xf32>
    %67 = arith.addf %64, %66 : vector<2x256xf32>
    %68 = arith.negf %67 : vector<2x256xf32>
    %69 = math.exp %68 : vector<2x256xf32>
    %cst_30 = arith.constant 1.000000e+00 : f32
    %70 = vector.broadcast %cst_30 : f32 to vector<2x256xf32>
    %71 = arith.addf %70, %69 : vector<2x256xf32>
    %72 = arith.divf %70, %71 : vector<2x256xf32>
    %73 = vector.shape_cast %72 : vector<2x256xf32> to vector<2x1x256xf32>
    %74 = vector.broadcast %73 : vector<2x1x256xf32> to vector<2x32x256xf32>
    %75 = arith.mulf %30, %74 : vector<2x32x256xf32>
    %c0_31 = arith.constant 0 : index
    %c0_32 = arith.constant 0 : index
    %c0_33 = arith.constant 0 : index
    %76 = vector.load %arg8[%c0_31, %c0_32, %c0_33] : memref<2x32x256xf32, #tpu.memory_space<vmem>>, vector<2x32x256xf32>
    tpu.vector_store %arg8[%c0_31, %c0_32, %c0_33], %75 {strides = array<i32>} : memref<2x32x256xf32, #tpu.memory_space<vmem>>, vector<2x32x256xf32>,
    return
  }
}

</mosaic_0001>

<bundles_post_ra>
// kernel: tpu_custom_call.1
= control target key start
LH: loop header
LB: loop body
LE: loop exit
PB: predicated region body
PF: predicated region fallthrough
CT: control target
= control target key end

     0   :  { %15 = vsyncpa [#allocation5], 0  ;;  %s1593_s0 = inlined_call_operand.hbm [shape: f32[2,32,256], index: 0, kind: input, shape index: {}]   ;;  %s1594_s1 = inlined_call_operand.vmem [shape: f32[32,2], index: 1, kind: input, shape index: {}]   ;;  %s1595_s2 = inlined_call_operand.vmem [shape: f32[1,2], index: 2, kind: input, shape index: {}]   ;;  %s1596_s3 = inlined_call_operand.vmem [shape: f32[2,32], index: 3, kind: input, shape index: {}]   ;;  %s1597_s4 = inlined_call_operand.vmem [shape: f32[1,32], index: 4, kind: input, shape index: {}]   ;;  %s1598_s5 = inlined_call_operand.hbm [shape: f32[512,256], index: 5, kind: input, shape index: {}]   ;;  %s1599_s6 = inlined_call_operand.<no memory space> [shape: f32[1], index: 6, kind: input, shape index: {}]   ;;  %s1600_s7 = inlined_call_operand.<no memory space> [shape: f32[1], index: 7, kind: input, shape index: {}]   ;;  %s1601_s8 = inlined_call_operand.hbm [shape: f32[2,32,256], index: 8, kind: output, shape index: {}]  }
   0x1   :  { %16 = vsyncpa [#allocation8], 0 }
   0x2   :  { %17 = vsyncpa [#allocation6], 0  ;;  %s1257_s27 = smov [#allocation4]   ;;  %s1185_s9 = scalar_lea.hbm %s1593_s0, 2048 }
   0x3   :  { %s23_s28 = sshll.u32 %s1257_s27, 4  ;;  %p1186_p0 = scmp.ne.s32.totalorder %s1593_s0, %s1185_s9  ;;  %s24_s28 = int_to_ptr.vmem [resolvable:$true] %s23_s28 }
   0x4   :  { %p1189_p1 = scmp.lt.u32.totalorder %s1185_s9, %s1593_s0 }
   0x6   :  { %p1191_p2 = pnand %p1189_p1, %p1186_p0 }
   0x8   :  { %1194 = shalt.err (!%p1191_p2)
}
   0x9   :  { %s1195_s14 = scalar_lea.vmem %s24_s28, 2048  ;;  %p1200_p4 = scmp.lt.s32.totalorder %s24_s28, %s24_s28 }
   0xa   :  { %p1196_p3 = scmp.ne.s32.totalorder %s24_s28, %s1195_s14  ;;  %p1201_p5 = scmp.lt.s32.totalorder %s1195_s14, %s1195_s14 }
   0xc   :  { %p1202_p6 = por %p1201_p5, %p1200_p4 }
   0xe   :  { %p1203_p7 = pnand %p1202_p6, %p1196_p3 }
  0x10   :  { %1206 = shalt.err (!%p1203_p7)
}
  0x11   :  { %s1258_s15 = smov 256   ;;  %s1259_s16 = smov 16  }
  0x12   :  { %29 = dma.hbm_to_vmem [thread:$0]  %s1593_s0, 2048, %s24_s28, [#allocation5], %s1258_s15, %s1258_s15, %s1259_s16  }
  0x13   :  { %s1260_s19 = smov [#allocation7]   ;;  %s1207_s23 = scalar_lea.hbm %s1598_s5, 16384 }
  0x14   :  { %s43_s20 = sshll.u32 %s1260_s19, 4  ;;  %p1208_p8 = scmp.ne.s32.totalorder %s1598_s5, %s1207_s23  ;;  %s44_s20 = int_to_ptr.vmem [resolvable:$true] %s43_s20 }
  0x15   :  { %p1211_p9 = scmp.lt.u32.totalorder %s1207_s23, %s1598_s5 }
  0x17   :  { %p1213_p10 = pnand %p1211_p9, %p1208_p8 }
  0x19   :  { %1216 = shalt.err (!%p1213_p10)
}
  0x1a   :  { %s1217_s29 = scalar_lea.vmem %s44_s20, 16384  ;;  %p1222_p12 = scmp.lt.s32.totalorder %s44_s20, %s44_s20 }
  0x1b   :  { %p1218_p11 = scmp.ne.s32.totalorder %s44_s20, %s1217_s29  ;;  %p1223_p13 = scmp.lt.s32.totalorder %s1217_s29, %s1217_s29 }
  0x1d   :  { %p1224_p0 = por %p1223_p13, %p1222_p12 }
  0x1f   :  { %p1225_p1 = pnand %p1224_p0, %p1218_p11 }
  0x21   :  { %1228 = shalt.err (!%p1225_p1)
}
  0x22   :  { %49 = dma.hbm_to_vmem [thread:$0]  %s1598_s5, 16384, %s44_s20, [#allocation8], %s1258_s15, %s1258_s15, %s1259_s16  }
  0x23   :  { %1251 = dma.done.wait [#allocation5], 2048  }
  0x24   :  { %1252 = vsyncadd [#allocation5], 4294965248 }
  0x25   :  { %1253 = dma.done.wait [#allocation8], 16384  }
  0x26   :  { %1254 = vsyncadd [#allocation8], 4294950912  ;;  %v1341_v0 = vld [vmem:[#allocation4 + $0x40] sm:$0xff]  ;;  %v1343_v1 = vld [vmem:[#allocation4 + $0x48] sm:$0xff]  ;;  %v1261_v35 = vmov 0.0|0.0   ;;  %vm1262_vm0 = vmmov 0   ;;  %v141_v45 = vlaneseq }
  0x27   :  { %v1345_v2 = vld [vmem:[#allocation4] sm:$0xff]  ;;  %v88_v3 = vadd.f32 %v1343_v1, %v1341_v0  ;;  %v1349_v4 = vld [vmem:[#allocation4 + $0x8] sm:$0xff]  ;;  %v1351_v5 = vld [vmem:[#allocation4 + $0x50] sm:$0xff]  ;;  %v121_v27 = vmax.f32 %v1341_v0, %v1343_v1  ;;  %1022 = vmatprep.subr.bf16.mxu0 %v1261_v35  ;;  %v1263_v39 = vmov 0.0   ;;  %vm152_vm1 = vcmask 130112  }
  0x28   :  { %v1353_v6 = vld [vmem:[#allocation4 + $0x58] sm:$0xff]  ;;  %v76_v7 = vadd.f32 %v1349_v4, %v1345_v2  ;;  %v1357_v8 = vld [vmem:[#allocation4 + $0x10] sm:$0xff]  ;;  %v1365_v12 = vld [vmem:[#allocation4 + $0x60] sm:$0xff]  ;;  %v109_v25 = vmax.f32 %v1345_v2, %v1349_v4  ;;  %1014 = vmatprep.mubr.msk.f32.mxu0 %vm1262_vm0, %v1263_v39  ;;  %1017 = vmatprep.subr.mxu1 %v1263_v39  ;;  %v142_v48 = vand.u32 127, %v141_v45  ;;  %v1417_v50 = vshrl.u32 %v141_v45, 7 }
  0x29   :  { %v1359_v9 = vld [vmem:[#allocation4 + $0x18] sm:$0xff]  ;;  %89 = vadd.xlane.f32.xlu1 %v88_v3  ;;  %v91_v10 = vadd.f32 %v1353_v6, %v1351_v5  ;;  %v1367_v13 = vld [vmem:[#allocation4 + $0x68] sm:$0xff]  ;;  %v1369_v14 = vld [vmem:[#allocation4 + $0x20] sm:$0xff]  ;;  %v124_v26 = vmax.f32 %v1351_v5, %v1353_v6  ;;  %1019 = vmatprep.mubr.msk.f32.mxu1 %vm1262_vm0, %v1263_v39  ;;  %vm159_vm2 = vcmask 195712   ;;  %vm166_vm3 = vcmask 261312  }
  0x2a   :  { %77 = vadd.xlane.f32.xlu0 %v76_v7  ;;  %v79_v11 = vadd.f32 %v1359_v9, %v1357_v8  ;;  %v1371_v15 = vld [vmem:[#allocation4 + $0x28] sm:$0xff]  ;;  %v94_v16 = vadd.f32 %v1367_v13, %v1365_v12  ;;  %v1377_v18 = vld [vmem:[#allocation4 + $0x70] sm:$0xff]  ;;  %v1379_v19 = vld [vmem:[#allocation4 + $0x78] sm:$0xff]  ;;  %v112_v24 = vmax.f32 %v1357_v8, %v1359_v9  ;;  %v127_v28 = vmax.f32 %v1365_v12, %v1367_v13 }
  0x2b   :  { %v82_v17 = vadd.f32 %v1371_v15, %v1369_v14  ;;  %v1381_v20 = vld [vmem:[#allocation4 + $0x30] sm:$0xff]  ;;  %v1383_v21 = vld [vmem:[#allocation4 + $0x38] sm:$0xff]  ;;  %v97_v22 = vadd.f32 %v1379_v19, %v1377_v18  ;;  %v115_v29 = vmax.f32 %v1369_v14, %v1371_v15  ;;  %v130_v30 = vmax.f32 %v1377_v18, %v1379_v19  ;;  %v241_v32 = vld [vmem:[%s1594_s1] sm:$0xff] }
  0x2c   :  { %v85_v23 = vadd.f32 %v1383_v21, %v1381_v20  ;;  %v118_v31 = vmax.f32 %v1381_v20, %v1383_v21  ;;  %v242_v33 = vld [vmem:[%s1594_s1 + $0x8] sm:$0xff]  ;;  %v243_v36 = vld [vmem:[%s1594_s1 + $0x10] sm:$0xff]  ;;  %v244_v37 = vld [vmem:[%s1594_s1 + $0x18] sm:$0xff]  ;;  %v147_v51 = vadd.s32 4294967288, %v142_v48  ;;  %v154_v52 = vadd.s32 4294967280, %v142_v48 }
  0x2d   :  { %92 = vadd.xlane.f32.xlu1 %v91_v10  ;;  %v1023_v34 = vpack.c.bf16 %v242_v33, %v241_v32  ;;  %v1026_v38 = vpack.c.bf16 %v244_v37, %v243_v36  ;;  %v161_v54 = vadd.s32 4294967272, %v142_v48  ;;  %v145_v56 = vsub.s32 %v142_v48, %v1417_v50 }
  0x2e   :  { %80 = vadd.xlane.f32.xlu0 %v79_v11  ;;  %v150_v57 = vsub.s32 %v147_v51, %v1417_v50  ;;  %v157_v59 = vsub.s32 %v154_v52, %v1417_v50  ;;  %vm187_vm4 = vcmask 1041409   ;;  %vm236_vm5 = vcmask 1043459  }
  0x2f   :  { %1024 = vmatpush3.bf16.msra.mxu0 %v1023_v34  ;;  %v164_v10 = vsub.s32 %v161_v54, %v1417_v50  ;;  %vm239_vm6 = vcmask 1041408   ;;  %vm252_vm7 = vcmask 261120   ;;  %vm340_vm8 = vcmask 15360  }
  0x30   :  { %1025 = vmatprep.subr.bf16.mxu0 %v1261_v35 }
  0x31   :  { %95 = vadd.xlane.f32.xlu1 %v94_v16 }
  0x32   :  { %83 = vadd.xlane.f32.xlu0 %v82_v17 }
  0x33   :  { %1027 = vmatpush3.bf16.msra.mxu0 %v1026_v38 }
  0x35   :  { %98 = vadd.xlane.f32.xlu1 %v97_v22 }
  0x36   :  { %86 = vadd.xlane.f32.xlu0 %v85_v23 }
  0x39   :  { %113 = vmax.xlane.f32.xlu1 %v112_v24 }
  0x3a   :  { %110 = vmax.xlane.f32.xlu0 %v109_v25 }
  0x3d   :  { %125 = vmax.xlane.f32.xlu1 %v124_v26 }
  0x3e   :  { %122 = vmax.xlane.f32.xlu0 %v121_v27 }
  0x41   :  { %128 = vmax.xlane.f32.xlu1 %v127_v28 }
  0x42   :  { %116 = vmax.xlane.f32.xlu0 %v115_v29 }
  0x45   :  { %131 = vmax.xlane.f32.xlu1 %v130_v30 }
  0x46   :  { %119 = vmax.xlane.f32.xlu0 %v118_v31 }
  0xb6   :  { %v90_v40 = vpop.xlane.xlu1 %89 }
  0xb7   :  { %v78_v41 = vpop.xlane.xlu0 %77  ;;  %v105_v60 = vmul.f32 0.00390625, %v90_v40 }
  0xb8   :  { %v101_v61 = vmul.f32 0.00390625, %v78_v41 }
  0xb9   :  { %v171_v23 = vrot.slane %v105_v60, %v145_v56 }
  0xba   :  { %v93_v42 = vpop.xlane.xlu1 %92  ;;  %v146_v24 = vrot.slane %v101_v61, %v145_v56 }
  0xbb   :  { %v81_v43 = vpop.xlane.xlu0 %80  ;;  %v106_v58 = vmul.f32 0.00390625, %v93_v42 }
  0xbc   :  { %v102_v62 = vmul.f32 0.00390625, %v81_v43 }
  0xbd   :  { %v175_v22 = vrot.slane %v106_v58, %v150_v57  ;;  %v331_v58 = vld [vmem:[%s1596_s3] sm:$0x3] }
  0xbe   :  { %v96_v44 = vpop.xlane.xlu1 %95  ;;  %v151_v25 = vrot.slane %v102_v62, %v150_v57  ;;  %1018 = vmatpush3.msk.msra.mxu1 %vm239_vm6, %v331_v58 }
  0xbf   :  { %v84_v46 = vpop.xlane.xlu0 %83  ;;  %v107_v63 = vmul.f32 0.00390625, %v96_v44  ;;  %v176_v37 = vsel %vm152_vm1, %v175_v22, %v171_v23  ;;  %v572_v22 = vld [vmem:[#allocation7 + $0x10] sm:$0xff]  ;;  %v635_v23 = vld [vmem:[#allocation7 + $0x208] sm:$0xff] }
  0xc0   :  { %v103_v7 = vmul.f32 0.00390625, %v84_v46  ;;  %v153_v39 = vsel %vm152_vm1, %v151_v25, %v146_v24  ;;  %v637_v24 = vld [vmem:[#allocation7 + $0x218] sm:$0xff] }
  0xc1   :  { %v180_v26 = vrot.slane %v107_v63, %v157_v59 }
  0xc2   :  { %v99_v47 = vpop.xlane.xlu1 %98  ;;  %v158_v28 = vrot.slane %v103_v7, %v157_v59 }
  0xc3   :  { %v87_v49 = vpop.xlane.xlu0 %86  ;;  %v108_v11 = vmul.f32 0.00390625, %v99_v47  ;;  %v181_v40 = vsel %vm159_vm2, %v180_v26, %v176_v37  ;;  %v1092_v26 = vpack.c.bf16 %v637_v24, %v635_v23  ;;  %v641_v37 = vld [vmem:[#allocation7 + $0x238] sm:$0xff]  ;;  %v586_v24 = vld [vmem:[#allocation7 + $0x80] sm:$0xff] }
  0xc4   :  { %v104_v17 = vmul.f32 0.00390625, %v87_v49  ;;  %v160_v42 = vsel %vm159_vm2, %v158_v28, %v153_v39  ;;  %v636_v28 = vld [vmem:[#allocation7 + $0x210] sm:$0xff] }
  0xc5   :  { %v185_v29 = vrot.slane %v108_v11, %v164_v10  ;;  %v573_v11 = vld [vmem:[#allocation7 + $0x18] sm:$0xff]  ;;  %1093 = vmatprep.subr.bf16.mxu1 %v1092_v26  ;;  %v650_v26 = vld [vmem:[#allocation7 + $0x280] sm:$0xff] }
  0xc6   :  { %v114_v53 = vpop.xlane.xlu1 %113  ;;  %v165_v33 = vrot.slane %v104_v17, %v164_v10 }
  0xc7   :  { %v111_v55 = vpop.xlane.xlu0 %110  ;;  %v205_v34 = vrot.slane %v114_v53, %v150_v57  ;;  %v186_v43 = vsel %vm166_vm3, %v185_v29, %v181_v40  ;;  %v575_v29 = vld [vmem:[#allocation7 + $0x28] sm:$0xff]  ;;  %v640_v40 = vld [vmem:[#allocation7 + $0x230] sm:$0xff] }
  0xc8   :  { %v201_v35 = vrot.slane %v111_v55, %v145_v56  ;;  %v167_v47 = vsel %vm166_vm3, %v165_v33, %v160_v42  ;;  %v576_v33 = vld [vmem:[#allocation7 + $0x30] sm:$0xff]  ;;  %v581_v42 = vld [vmem:[#allocation7 + $0x58] sm:$0xff] }
  0xc9   :  { %v188_v55 = vsel %vm187_vm4, %v186_v43, %v167_v47  ;;  %v643_v47 = vld [vmem:[#allocation7 + $0x248] sm:$0xff] }
  0xca   :  { %v126_v3 = vpop.xlane.xlu1 %125  ;;  %v206_v48 = vsel %vm152_vm1, %v205_v34, %v201_v35 }
  0xcb   :  { %v123_v16 = vpop.xlane.xlu0 %122  ;;  %v224_v30 = vrot.slane %v126_v3, %v150_v57 }
  0xcc   :  { %v220_v31 = vrot.slane %v123_v16, %v145_v56  ;;  %v570_v16 = vld [vmem:[#allocation7] sm:$0xff] }
  0xcd   :  { %v1030_v25 = vpack.c.bf16 %v572_v22, %v570_v16  ;;  %v651_v16 = vld [vmem:[#allocation7 + $0x288] sm:$0xff] }
  0xce   :  { %v129_v27 = vpop.xlane.xlu1 %128  ;;  %v225_v44 = vsel %vm152_vm1, %v224_v30, %v220_v31  ;;  %v577_v31 = vld [vmem:[#allocation7 + $0x38] sm:$0xff] }
  0xcf   :  { %v117_v32 = vpop.xlane.xlu0 %116  ;;  %v229_v36 = vrot.slane %v129_v27, %v157_v59  ;;  %v634_v27 = vld [vmem:[#allocation7 + $0x200] sm:$0xff]  ;;  %v1032_v34 = vpack.c.bf16 %v577_v31, %v575_v29  ;;  %v591_v29 = vld [vmem:[#allocation7 + $0xa8] sm:$0xff] }
  0xd0   :  { %v210_v38 = vrot.slane %v117_v32, %v157_v59  ;;  %v992_v59 = vld [vmem:[%s1595_s2] ss:$0 sm:$0xff]  ;;  %v1094_v30 = vpack.c.bf16 %v636_v28, %v634_v27  ;;  %v652_v28 = vld [vmem:[#allocation7 + $0x290] sm:$0xff]  ;;  %v655_v31 = vld [vmem:[#allocation7 + $0x2a8] sm:$0xff] }
  0xd1   :  { %v230_v49 = vsel %vm159_vm2, %v229_v36, %v225_v44  ;;  %v574_v32 = vld [vmem:[#allocation7 + $0x20] sm:$0xff]  ;;  %v639_v36 = vld [vmem:[#allocation7 + $0x228] sm:$0xff] }
  0xd2   :  { %v132_v41 = vpop.xlane.xlu1 %131  ;;  %v211_v52 = vsel %vm159_vm2, %v210_v38, %v206_v48  ;;  %v1034_v35 = vpack.c.bf16 %v576_v33, %v574_v32  ;;  %v638_v38 = vld [vmem:[#allocation7 + $0x220] sm:$0xff]  ;;  %v1096_v39 = vpack.c.bf16 %v641_v37, %v639_v36  ;;  %v645_v48 = vld [vmem:[#allocation7 + $0x258] sm:$0xff]  ;;  %v592_v37 = vld [vmem:[#allocation7 + $0xb0] sm:$0xff] }
  0xd3   :  { %v234_v45 = vrot.slane %v132_v41, %v164_v10  ;;  %v120_v46 = vpop.xlane.xlu0 %119  ;;  %v579_v41 = vld [vmem:[#allocation7 + $0x48] sm:$0xff]  ;;  %v1098_v43 = vpack.c.bf16 %v640_v40, %v638_v38  ;;  %v657_v32 = vld [vmem:[#allocation7 + $0x2b8] sm:$0xff]  ;;  %v590_v36 = vld [vmem:[#allocation7 + $0xa0] sm:$0xff] }
  0xd4   :  { %v215_v51 = vrot.slane %v120_v46, %v164_v10  ;;  %v571_v10 = vld [vmem:[#allocation7 + $0x8] sm:$0xff]  ;;  %v1036_v44 = vpack.c.bf16 %v581_v42, %v579_v41  ;;  %v580_v46 = vld [vmem:[#allocation7 + $0x50] sm:$0xff]  ;;  %v654_v38 = vld [vmem:[#allocation7 + $0x2a0] sm:$0xff] }
  0xd5   :  { %v235_v53 = vsel %vm166_vm3, %v234_v45, %v230_v49  ;;  %v1028_v17 = vpack.c.bf16 %v573_v11, %v571_v10  ;;  %v578_v45 = vld [vmem:[#allocation7 + $0x40] sm:$0xff]  ;;  %v589_v10 = vld [vmem:[#allocation7 + $0x98] sm:$0xff]  ;;  %v656_v40 = vld [vmem:[#allocation7 + $0x2b0] sm:$0xff] }
  0xd6   :  { %v216_v54 = vsel %vm166_vm3, %v215_v51, %v211_v52  ;;  %v642_v49 = vld [vmem:[#allocation7 + $0x240] sm:$0xff]  ;;  %v644_v51 = vld [vmem:[#allocation7 + $0x250] sm:$0xff]  ;;  %v1038_v52 = vpack.c.bf16 %v580_v46, %v578_v45  ;;  %v595_v41 = vld [vmem:[#allocation7 + $0xc8] sm:$0xff]  ;;  %v1050_v45 = vpack.c.bf16 %v592_v37, %v590_v36  ;;  %v1114_v46 = vpack.c.bf16 %v656_v40, %v654_v38 }
  0xd7   :  { %v237_v56 = vsel %vm236_vm5, %v235_v53, %v216_v54  ;;  %1029 = vmatprep.subr.bf16.mxu0 %v1028_v17  ;;  %v1100_v53 = vpack.c.bf16 %v645_v48, %v643_v47  ;;  %v583_v54 = vld [vmem:[#allocation7 + $0x68] sm:$0xff]  ;;  %v653_v17 = vld [vmem:[#allocation7 + $0x298] sm:$0xff]  ;;  %v594_v48 = vld [vmem:[#allocation7 + $0xc0] sm:$0xff] }
  0xd8   :  { %v240_v57 = vsel %vm239_vm6, %v188_v55, %v237_v56  ;;  %v585_v55 = vld [vmem:[#allocation7 + $0x78] sm:$0xff]  ;;  %v582_v56 = vld [vmem:[#allocation7 + $0x60] sm:$0xff]  ;;  %v1108_v27 = vpack.c.bf16 %v653_v17, %v651_v16  ;;  %v667_v36 = vld [vmem:[#allocation7 + $0x308] sm:$0xff] }
  0xd9   :  { %1015 = vmatmul.mubr.msk.f32.vlgmr.msra.gmra.mrb[0].mxu0 %vm252_vm7, %v240_v57  ;;  %v1102_v57 = vpack.c.bf16 %v644_v51, %v642_v49  ;;  %v1040_v58 = vpack.c.bf16 %v585_v55, %v583_v54  ;;  %v597_v42 = vld [vmem:[#allocation7 + $0xd8] sm:$0xff]  ;;  %v596_v49 = vld [vmem:[#allocation7 + $0xd0] sm:$0xff]  ;;  %v658_v51 = vld [vmem:[#allocation7 + $0x2c0] sm:$0xff] }
  0xda   :  { %1031 = vmatpush1.bf16.msra.mxu0 %v1030_v25  ;;  %v588_v25 = vld [vmem:[#allocation7 + $0x90] sm:$0xff]  ;;  %v1052_v47 = vpack.c.bf16 %v597_v42, %v595_v41  ;;  %v599_v54 = vld [vmem:[#allocation7 + $0xe8] sm:$0xff]  ;;  %v601_v55 = vld [vmem:[#allocation7 + $0xf8] sm:$0xff] }
  0xdb   :  { %1033 = vmatprep.subr.bf16.mxu0 %v1032_v34  ;;  %v1046_v33 = vpack.c.bf16 %v588_v25, %v586_v24  ;;  %v1110_v34 = vpack.c.bf16 %v652_v28, %v650_v26  ;;  %v665_v24 = vld [vmem:[#allocation7 + $0x2f8] sm:$0xff]  ;;  %v664_v28 = vld [vmem:[#allocation7 + $0x2f0] sm:$0xff]  ;;  %v607_v42 = vld [vmem:[#allocation7 + $0x128] sm:$0xff] }
  0xdc   :  { %v669_v37 = vld [vmem:[#allocation7 + $0x318] sm:$0xff]  ;;  %v668_v40 = vld [vmem:[#allocation7 + $0x310] sm:$0xff] }
  0xdd   :  { %v1124_v38 = vpack.c.bf16 %v669_v37, %v667_v36  ;;  %v619_v36 = vld [vmem:[#allocation7 + $0x188] sm:$0xff]  ;;  %v621_v37 = vld [vmem:[#allocation7 + $0x198] sm:$0xff] }
  0xde   :  { %1035 = vmatpush1.bf16.msra.mxu0 %v1034_v35 }
  0xdf   :  { %1037 = vmatprep.subr.bf16.mxu0 %v1036_v44  ;;  %v661_v44 = vld [vmem:[#allocation7 + $0x2d8] sm:$0xff] }
  0xe2   :  { %1039 = vmatpush1.bf16.msra.mxu0 %v1038_v52 }
  0xe3   :  { %1041 = vmatprep.subr.bf16.mxu0 %v1040_v58  ;;  %v1056_v58 = vpack.c.bf16 %v601_v55, %v599_v54  ;;  %v611_v55 = vld [vmem:[#allocation7 + $0x148] sm:$0xff] }
 0x1ac   :  { %v322_v60 = vpop.f32.mrb[0].mxu0 }
 0x1ad   :  { %v323_v61 = vadd.f32 %v992_v59, %v322_v60  ;;  %v1016_v62 = vpop.f32.mrb[1].mxu0  ;;  %v584_v59 = vld [vmem:[#allocation7 + $0x70] sm:$0xff]  ;;  %v647_v60 = vld [vmem:[#allocation7 + $0x268] sm:$0xff] }
 0x1ae   :  { %v1042_v11 = vpack.c.bf16 %v584_v59, %v582_v56  ;;  %v1054_v56 = vpack.c.bf16 %v596_v49, %v594_v48  ;;  %v598_v59 = vld [vmem:[#allocation7 + $0xe0] sm:$0xff]  ;;  %v671_v48 = vld [vmem:[#allocation7 + $0x328] sm:$0xff]  ;;  %v673_v49 = vld [vmem:[#allocation7 + $0x338] sm:$0xff] }
 0x1af   :  { %v326_v63 = vmax.f32 %v323_v61, 0.0  ;;  %v649_v61 = vld [vmem:[#allocation7 + $0x278] sm:$0xff] }
 0x1b0   :  { %v1104_v62 = vpack.c.bf16 %v649_v61, %v647_v60  ;;  %1043 = vmatpush1.bf16.msra.mxu0 %v1042_v11  ;;  %v600_v60 = vld [vmem:[#allocation7 + $0xf0] sm:$0xff] }
 0x1b1   :  { %v328_v3 = vrot.slane %v326_v63, 2  ;;  %v1058_v61 = vpack.c.bf16 %v600_v60, %v598_v59  ;;  %v612_v59 = vld [vmem:[#allocation7 + $0x150] sm:$0xff] }
 0x1b3   :  { %v330_v7 = vadd.f32 %v328_v3, %v326_v63  ;;  %v646_v63 = vld [vmem:[#allocation7 + $0x260] sm:$0xff]  ;;  %v648_v3 = vld [vmem:[#allocation7 + $0x270] sm:$0xff] }
 0x1b4   :  { %v1106_v22 = vpack.c.bf16 %v648_v3, %v646_v63  ;;  %v1449_v3 = vsub.s32 0, %v1417_v50 }
 0x1b5   :  { %1020 = vmatmul.mubr.msk.f32.vlgmr.msra.gmra.mrb[0].mxu1 %vm340_vm8, %v330_v7  ;;  %v587_v7 = vld [vmem:[#allocation7 + $0x88] sm:$0xff] }
 0x1b6   :  { %1095 = vmatpush1.bf16.msra.mxu1 %v1094_v30  ;;  %v1044_v23 = vpack.c.bf16 %v589_v10, %v587_v7  ;;  %v593_v30 = vld [vmem:[#allocation7 + $0xb8] sm:$0xff] }
 0x1b7   :  { %1097 = vmatprep.subr.bf16.mxu1 %v1096_v39  ;;  %v1048_v35 = vpack.c.bf16 %v593_v30, %v591_v29  ;;  %v1112_v39 = vpack.c.bf16 %v657_v32, %v655_v31  ;;  %v603_v30 = vld [vmem:[#allocation7 + $0x108] sm:$0xff]  ;;  %v605_v31 = vld [vmem:[#allocation7 + $0x118] sm:$0xff] }
 0x1b8   :  { %1045 = vmatprep.subr.bf16.mxu0 %v1044_v23  ;;  %v663_v23 = vld [vmem:[#allocation7 + $0x2e8] sm:$0xff]  ;;  %v1060_v32 = vpack.c.bf16 %v605_v31, %v603_v30  ;;  %v681_v30 = vld [vmem:[#allocation7 + $0x378] sm:$0xff] }
 0x1b9   :  { %1047 = vmatpush1.bf16.msra.mxu0 %v1046_v33  ;;  %v1120_v26 = vpack.c.bf16 %v665_v24, %v663_v23  ;;  %v602_v33 = vld [vmem:[#allocation7 + $0x100] sm:$0xff]  ;;  %v615_v23 = vld [vmem:[#allocation7 + $0x168] sm:$0xff]  ;;  %v617_v24 = vld [vmem:[#allocation7 + $0x178] sm:$0xff] }
 0x1ba   :  { %1099 = vmatpush1.bf16.msra.mxu1 %v1098_v43  ;;  %v659_v43 = vld [vmem:[#allocation7 + $0x2c8] sm:$0xff]  ;;  %1049 = vmatprep.subr.bf16.mxu0 %v1048_v35 }
 0x1bb   :  { %1101 = vmatprep.subr.bf16.mxu1 %v1100_v53  ;;  %v1116_v52 = vpack.c.bf16 %v661_v44, %v659_v43  ;;  %v660_v53 = vld [vmem:[#allocation7 + $0x2d0] sm:$0xff]  ;;  %v609_v43 = vld [vmem:[#allocation7 + $0x138] sm:$0xff] }
 0x1bc   :  { %v1064_v44 = vpack.c.bf16 %v609_v43, %v607_v42  ;;  %v683_v42 = vld [vmem:[#allocation7 + $0x388] sm:$0xff]  ;;  %v685_v43 = vld [vmem:[#allocation7 + $0x398] sm:$0xff] }
 0x1bd   :  { %1051 = vmatpush1.bf16.msra.mxu0 %v1050_v45  ;;  %v606_v45 = vld [vmem:[#allocation7 + $0x120] sm:$0xff] }
 0x1be   :  { %1103 = vmatpush1.bf16.msra.mxu1 %v1102_v57  ;;  %1053 = vmatprep.subr.bf16.mxu0 %v1052_v47  ;;  %v1118_v57 = vpack.c.bf16 %v660_v53, %v658_v51  ;;  %v1128_v51 = vpack.c.bf16 %v673_v49, %v671_v48  ;;  %v672_v53 = vld [vmem:[#allocation7 + $0x330] sm:$0xff]  ;;  %v623_v48 = vld [vmem:[#allocation7 + $0x1a8] sm:$0xff]  ;;  %v625_v49 = vld [vmem:[#allocation7 + $0x1b8] sm:$0xff] }
 0x1bf   :  { %1105 = vmatprep.subr.bf16.mxu1 %v1104_v62  ;;  %v332_v62 = vld [vmem:[%s1597_s4] sm:$0x1] }
 0x1c0   :  { %v333_v63 = vmul.f32 2.0, %v332_v62  ;;  %v675_v62 = vld [vmem:[#allocation7 + $0x348] sm:$0xff] }
 0x1c1   :  { %1055 = vmatpush1.bf16.msra.mxu0 %v1054_v56  ;;  %v613_v56 = vld [vmem:[#allocation7 + $0x158] sm:$0xff] }
 0x1c2   :  { %1107 = vmatpush1.bf16.msra.mxu1 %v1106_v22  ;;  %1057 = vmatprep.subr.bf16.mxu0 %v1056_v58  ;;  %v338_v7 = vrot.slane %v333_v63, %v1449_v3  ;;  %v610_v58 = vld [vmem:[#allocation7 + $0x140] sm:$0xff]  ;;  %v677_v63 = vld [vmem:[#allocation7 + $0x358] sm:$0xff] }
 0x1c3   :  { %1109 = vmatprep.subr.bf16.mxu1 %v1108_v27  ;;  %v662_v27 = vld [vmem:[#allocation7 + $0x2e0] sm:$0xff] }
 0x1c4   :  { %v1122_v29 = vpack.c.bf16 %v664_v28, %v662_v27  ;;  %v616_v27 = vld [vmem:[#allocation7 + $0x170] sm:$0xff] }
 0x1c5   :  { %1059 = vmatpush1.bf16.msra.mxu0 %v1058_v61  ;;  %v1070_v61 = vpack.c.bf16 %v612_v59, %v610_v58  ;;  %v686_v58 = vld [vmem:[#allocation7 + $0x3a0] sm:$0xff]  ;;  %v688_v59 = vld [vmem:[#allocation7 + $0x3b0] sm:$0xff] }
 0x1c6   :  { %1111 = vmatpush1.bf16.msra.mxu1 %v1110_v34  ;;  %v604_v34 = vld [vmem:[#allocation7 + $0x110] sm:$0xff]  ;;  %1061 = vmatprep.subr.bf16.mxu0 %v1060_v32 }
 0x1c7   :  { %1113 = vmatprep.subr.bf16.mxu1 %v1112_v39  ;;  %v1062_v35 = vpack.c.bf16 %v604_v34, %v602_v33  ;;  %v666_v39 = vld [vmem:[#allocation7 + $0x300] sm:$0xff]  ;;  %v680_v34 = vld [vmem:[#allocation7 + $0x370] sm:$0xff] }
 0x1c8   :  { %v1126_v41 = vpack.c.bf16 %v668_v40, %v666_v39  ;;  %v678_v33 = vld [vmem:[#allocation7 + $0x360] sm:$0xff]  ;;  %v620_v40 = vld [vmem:[#allocation7 + $0x190] sm:$0xff] }
 0x1c9   :  { %1063 = vmatpush1.bf16.msra.mxu0 %v1062_v35  ;;  %v1138_v35 = vpack.c.bf16 %v680_v34, %v678_v33  ;;  %v618_v39 = vld [vmem:[#allocation7 + $0x180] sm:$0xff]  ;;  %v695_v33 = vld [vmem:[#allocation7 + $0x3e8] sm:$0xff] }
 0x1ca   :  { %1115 = vmatpush1.bf16.msra.mxu1 %v1114_v46  ;;  %v608_v46 = vld [vmem:[#allocation7 + $0x130] sm:$0xff]  ;;  %1065 = vmatprep.subr.bf16.mxu0 %v1064_v44  ;;  %v1140_v44 = vpack.c.bf16 %v685_v43, %v683_v42 }
 0x1cb   :  { %1117 = vmatprep.subr.bf16.mxu1 %v1116_v52  ;;  %v1066_v47 = vpack.c.bf16 %v608_v46, %v606_v45  ;;  %v670_v52 = vld [vmem:[#allocation7 + $0x320] sm:$0xff]  ;;  %v684_v46 = vld [vmem:[#allocation7 + $0x390] sm:$0xff] }
 0x1cc   :  { %v1130_v54 = vpack.c.bf16 %v672_v53, %v670_v52  ;;  %v682_v45 = vld [vmem:[#allocation7 + $0x380] sm:$0xff]  ;;  %v624_v53 = vld [vmem:[#allocation7 + $0x1b0] sm:$0xff] }
 0x1cd   :  { %1067 = vmatpush1.bf16.msra.mxu0 %v1066_v47  ;;  %v1142_v47 = vpack.c.bf16 %v684_v46, %v682_v45  ;;  %v622_v52 = vld [vmem:[#allocation7 + $0x1a0] sm:$0xff] }
 0x1ce   :  { %1119 = vmatpush1.bf16.msra.mxu1 %v1118_v57  ;;  %v1068_v57 = vpack.c.bf16 %v613_v56, %v611_v55  ;;  %v687_v55 = vld [vmem:[#allocation7 + $0x3a8] sm:$0xff]  ;;  %v689_v56 = vld [vmem:[#allocation7 + $0x3b8] sm:$0xff] }
 0x1cf   :  { %1121 = vmatprep.subr.bf16.mxu1 %v1120_v26  ;;  %v614_v26 = vld [vmem:[#allocation7 + $0x160] sm:$0xff] }
 0x1d0   :  { %1069 = vmatprep.subr.bf16.mxu0 %v1068_v57  ;;  %v1074_v28 = vpack.c.bf16 %v616_v27, %v614_v26  ;;  %v1144_v57 = vpack.c.bf16 %v689_v56, %v687_v55  ;;  %v631_v26 = vld [vmem:[#allocation7 + $0x1e8] sm:$0xff]  ;;  %v633_v27 = vld [vmem:[#allocation7 + $0x1f8] sm:$0xff] }
 0x1d1   :  { %1071 = vmatpush1.bf16.msra.mxu0 %v1070_v61  ;;  %v627_v61 = vld [vmem:[#allocation7 + $0x1c8] sm:$0xff] }
 0x1d2   :  { %1123 = vmatpush1.bf16.msra.mxu1 %v1122_v29  ;;  %v679_v29 = vld [vmem:[#allocation7 + $0x368] sm:$0xff] }
 0x1d3   :  { %1125 = vmatprep.subr.bf16.mxu1 %v1124_v38  ;;  %v1136_v32 = vpack.c.bf16 %v681_v30, %v679_v29  ;;  %v1076_v38 = vpack.c.bf16 %v621_v37, %v619_v36  ;;  %v1088_v29 = vpack.c.bf16 %v633_v27, %v631_v26  ;;  %v630_v30 = vld [vmem:[#allocation7 + $0x1e0] sm:$0xff] }
 0x1d4   :  { %v694_v37 = vld [vmem:[#allocation7 + $0x3e0] sm:$0xff] }
 0x1d6   :  { %1127 = vmatpush1.bf16.msra.mxu1 %v1126_v41  ;;  %v1078_v41 = vpack.c.bf16 %v620_v40, %v618_v39 }
 0x1d7   :  { %1129 = vmatprep.subr.bf16.mxu1 %v1128_v51  ;;  %v1080_v51 = vpack.c.bf16 %v625_v49, %v623_v48 }
 0x1da   :  { %1131 = vmatpush1.bf16.msra.mxu1 %v1130_v54  ;;  %v1082_v54 = vpack.c.bf16 %v624_v53, %v622_v52 }
 0x288   :  { %v413_v10 = vpop.f32.mrb[0].mxu1 }
 0x289   :  { %v414_v11 = vadd.f32 %v413_v10, %v338_v7  ;;  %v1021_v16 = vpop.f32.mrb[1].mxu1  ;;  %v1454_v10 = vsub.s32 1, %v1417_v50 }
 0x28a   :  { %v674_v16 = vld [vmem:[#allocation7 + $0x340] sm:$0xff] }
 0x28b   :  { %v996_v17 = vmul.f32 -1.442695, %v414_v11  ;;  %v1132_v11 = vpack.c.bf16 %v677_v63, %v675_v62  ;;  %v629_v62 = vld [vmem:[#allocation7 + $0x1d8] sm:$0xff] }
 0x28c   :  { %v1084_v63 = vpack.c.bf16 %v629_v62, %v627_v61 }
 0x28d   :  { %1171 = vpow2.f32 %v996_v17  ;;  %v676_v17 = vld [vmem:[#allocation7 + $0x350] sm:$0xff]  ;;  %1133 = vmatprep.subr.bf16.mxu1 %v1132_v11 }
 0x28e   :  { %v628_v11 = vld [vmem:[#allocation7 + $0x1d0] sm:$0xff] }
 0x297   :  { %v1172_v22 = vpop.eup %1171 }
 0x298   :  { %v420_v25 = vadd.f32 1.0, %v1172_v22  ;;  %v1134_v22 = vpack.c.bf16 %v676_v17, %v674_v16  ;;  %v691_v17 = vld [vmem:[#allocation7 + $0x3c8] sm:$0xff] }
 0x29a   :  { %1173 = vrcp.f32 %v420_v25  ;;  %v1072_v25 = vpack.c.bf16 %v617_v24, %v615_v23  ;;  %1135 = vmatpush1.bf16.msra.mxu1 %v1134_v22  ;;  %v693_v22 = vld [vmem:[#allocation7 + $0x3d8] sm:$0xff]  ;;  %v690_v23 = vld [vmem:[#allocation7 + $0x3c0] sm:$0xff] }
 0x29b   :  { %1137 = vmatprep.subr.bf16.mxu1 %v1136_v32  ;;  %v1148_v24 = vpack.c.bf16 %v693_v22, %v691_v17  ;;  %v632_v32 = vld [vmem:[#allocation7 + $0x1f0] sm:$0xff] }
 0x29c   :  { %1073 = vmatprep.subr.bf16.mxu0 %v1072_v25  ;;  %v692_v25 = vld [vmem:[#allocation7 + $0x3d0] sm:$0xff]  ;;  %v1090_v34 = vpack.c.bf16 %v632_v32, %v630_v30 }
 0x29d   :  { %1075 = vmatpush1.bf16.msra.mxu0 %v1074_v28  ;;  %v1150_v28 = vpack.c.bf16 %v692_v25, %v690_v23 }
 0x29e   :  { %1139 = vmatpush1.bf16.msra.mxu1 %v1138_v35  ;;  %1077 = vmatprep.subr.bf16.mxu0 %v1076_v38  ;;  %v697_v35 = vld [vmem:[#allocation7 + $0x3f8] sm:$0xff]  ;;  %v696_v38 = vld [vmem:[#allocation7 + $0x3f0] sm:$0xff] }
 0x29f   :  { %1141 = vmatprep.subr.bf16.mxu1 %v1140_v44  ;;  %v1152_v36 = vpack.c.bf16 %v697_v35, %v695_v33  ;;  %v1154_v39 = vpack.c.bf16 %v696_v38, %v694_v37 }
 0x2a1   :  { %1079 = vmatpush1.bf16.msra.mxu0 %v1078_v41 }
 0x2a2   :  { %1143 = vmatpush1.bf16.msra.mxu1 %v1142_v47  ;;  %1081 = vmatprep.subr.bf16.mxu0 %v1080_v51 }
 0x2a3   :  { %1145 = vmatprep.subr.bf16.mxu1 %v1144_v57 }
 0x2a4   :  { %v1174_v60 = vpop.eup %1173 }
 0x2a5   :  { %v426_v7 = vrot.slane %v1174_v60, %v1449_v3  ;;  %v1457_v31 = vrot.slane %v1174_v60, %v1454_v10  ;;  %1083 = vmatpush1.bf16.msra.mxu0 %v1082_v54  ;;  %v1146_v60 = vpack.c.bf16 %v688_v59, %v686_v58 }
 0x2a6   :  { %1085 = vmatprep.subr.bf16.mxu0 %v1084_v63 }
 0x2a7   :  { %432 = vbcast.lane.b32.xlu1 %v426_v7, 264  ;;  %428 = vbcast.lane.b32.xlu0 %v426_v7, 256 }
 0x2a8   :  { %1147 = vmatpush1.bf16.msra.mxu1 %v1146_v60 }
 0x2a9   :  { %1149 = vmatprep.subr.bf16.mxu1 %v1148_v24 }
 0x2ab   :  { %447 = vbcast.lane.b32.xlu1 %v1457_v31, 256  ;;  %436 = vbcast.lane.b32.xlu0 %v426_v7, 272 }
 0x2ac   :  { %1151 = vmatpush1.bf16.msra.mxu1 %v1150_v28 }
 0x2ad   :  { %1153 = vmatprep.subr.bf16.mxu1 %v1152_v36 }
 0x2af   :  { %451 = vbcast.lane.b32.xlu1 %v1457_v31, 264  ;;  %440 = vbcast.lane.b32.xlu0 %v426_v7, 280  ;;  %v626_v7 = vld [vmem:[#allocation7 + $0x1c0] sm:$0xff] }
 0x2b0   :  { %v1086_v16 = vpack.c.bf16 %v628_v11, %v626_v7  ;;  %1155 = vmatpush1.bf16.msra.mxu1 %v1154_v39 }
 0x2b2   :  { %1087 = vmatpush1.bf16.msra.mxu0 %v1086_v16 }
 0x2b3   :  { %455 = vbcast.lane.b32.xlu1 %v1457_v31, 272  ;;  %1089 = vmatprep.subr.bf16.mxu0 %v1088_v29 }
 0x2b6   :  { %1091 = vmatpush1.bf16.msra.mxu0 %v1090_v34 }
 0x2b7   :  { %459 = vbcast.lane.b32.xlu1 %v1457_v31, 280 }
 0x319   :  { %v433_v40 = vpop.permute.xlu1 %432  ;;  %v429_v41 = vpop.permute.xlu0 %428 }
 0x31a   :  { %v1464_v42 = vmul.f32 %v433_v40, %v1357_v8  ;;  %v1467_v43 = vmul.f32 %v433_v40, %v1359_v9  ;;  %v1470_v31 = vmul.f32 %v429_v41, %v1345_v2  ;;  %v1473_v44 = vmul.f32 %v429_v41, %v1349_v4 }
 0x31c   :  { %v477_v8 = vmax.f32 %v1470_v31, %v1464_v42  ;;  %v486_v9 = vmax.f32 %v1473_v44, %v1467_v43  ;;  %v513_v2 = vadd.f32 %v1464_v42, %v1470_v31  ;;  %v522_v4 = vadd.f32 %v1467_v43, %v1473_v44 }
 0x31d   :  { %v448_v45 = vpop.permute.xlu1 %447  ;;  %v437_v46 = vpop.permute.xlu0 %436 }
 0x31e   :  { %v1476_v47 = vmul.f32 %v437_v46, %v1369_v14  ;;  %v1479_v48 = vmul.f32 %v437_v46, %v1371_v15 }
 0x320   :  { %v478_v54 = vmax.f32 %v477_v8, %v1476_v47  ;;  %v487_v55 = vmax.f32 %v486_v9, %v1479_v48  ;;  %v514_v56 = vadd.f32 %v513_v2, %v1476_v47  ;;  %v523_v57 = vadd.f32 %v522_v4, %v1479_v48 }
 0x321   :  { %v452_v49 = vpop.permute.xlu1 %451  ;;  %v441_v51 = vpop.permute.xlu0 %440 }
 0x322   :  { %v1490_v14 = vmul.f32 %v452_v49, %v1351_v5  ;;  %v1493_v15 = vmul.f32 %v452_v49, %v1353_v6  ;;  %v1496_v52 = vmul.f32 %v441_v51, %v1381_v20  ;;  %v1499_v53 = vmul.f32 %v441_v51, %v1383_v21 }
 0x323   :  { %v1506_v5 = vmul.f32 %v448_v45, %v1341_v0  ;;  %v1509_v6 = vmul.f32 %v448_v45, %v1343_v1 }
 0x324   :  { %v479_v20 = vmax.f32 %v478_v54, %v1496_v52  ;;  %v488_v58 = vmax.f32 %v487_v55, %v1499_v53  ;;  %v515_v21 = vadd.f32 %v514_v56, %v1496_v52  ;;  %v524_v59 = vadd.f32 %v523_v57, %v1499_v53 }
 0x325   :  { %v456_v60 = vpop.permute.xlu1 %455  ;;  %v495_v61 = vmax.f32 %v1506_v5, %v1490_v14  ;;  %v504_v62 = vmax.f32 %v1509_v6, %v1493_v15  ;;  %v531_v17 = vadd.f32 %v1490_v14, %v1506_v5  ;;  %v540_v22 = vadd.f32 %v1493_v15, %v1509_v6 }
 0x326   :  { %v1520_v0 = vmul.f32 %v456_v60, %v1365_v12  ;;  %v1523_v1 = vmul.f32 %v456_v60, %v1367_v13  ;;  %v480_v63 = vrot.slane %v479_v20, 4  ;;  %v489_v7 = vrot.slane %v488_v58, 4 }
 0x327   :  { %v516_v11 = vrot.slane %v515_v21, 4  ;;  %v525_v16 = vrot.slane %v524_v59, 4 }
 0x328   :  { %v496_v23 = vmax.f32 %v495_v61, %v1520_v0  ;;  %v505_v24 = vmax.f32 %v504_v62, %v1523_v1  ;;  %v481_v25 = vmax.f32 %v479_v20, %v480_v63  ;;  %v490_v12 = vmax.f32 %v488_v58, %v489_v7 }
 0x329   :  { %v517_v26 = vadd.f32 %v516_v11, %v515_v21  ;;  %v526_v27 = vadd.f32 %v525_v16, %v524_v59  ;;  %v460_v13 = vpop.permute.xlu1 %459  ;;  %v532_v28 = vadd.f32 %v531_v17, %v1520_v0  ;;  %v541_v29 = vadd.f32 %v540_v22, %v1523_v1 }
 0x32a   :  { %v1534_v30 = vmul.f32 %v460_v13, %v1377_v18  ;;  %v1537_v32 = vmul.f32 %v460_v13, %v1379_v19  ;;  %v482_v33 = vrot.slane %v481_v25, 2  ;;  %v491_v36 = vrot.slane %v490_v12, 2 }
 0x32b   :  { %v518_v34 = vrot.slane %v517_v26, 2  ;;  %v527_v35 = vrot.slane %v526_v27, 2 }
 0x32c   :  { %v497_v37 = vmax.f32 %v496_v23, %v1534_v30  ;;  %v506_v38 = vmax.f32 %v505_v24, %v1537_v32  ;;  %v533_v39 = vadd.f32 %v532_v28, %v1534_v30  ;;  %v542_v40 = vadd.f32 %v541_v29, %v1537_v32 }
 0x32d   :  { %v519_v41 = vadd.f32 %v518_v34, %v517_v26  ;;  %v528_v45 = vadd.f32 %v527_v35, %v526_v27  ;;  %v492_v19 = vmax.f32 %v490_v12, %v491_v36  ;;  %v483_v2 = vmax.f32 %v481_v25, %v482_v33 }
 0x32e   :  { %v498_v46 = vrot.slane %v497_v37, 4  ;;  %v507_v18 = vrot.slane %v506_v38, 4  ;;  %v534_v8 = vrot.slane %v533_v39, 4  ;;  %v543_v9 = vrot.slane %v542_v40, 4 }
 0x32f   :  { %v529_v55 = vrot.slane %v528_v45, 1  ;;  %v520_v56 = vrot.slane %v519_v41, 1  ;;  %v493_v59 = vrot.slane %v492_v19, 1  ;;  %v484_v60 = vrot.slane %v483_v2, 1 }
 0x330   :  { %v499_v4 = vmax.f32 %v497_v37, %v498_v46  ;;  %v508_v49 = vmax.f32 %v506_v38, %v507_v18  ;;  %v535_v51 = vadd.f32 %v534_v8, %v533_v39  ;;  %v544_v54 = vadd.f32 %v543_v9, %v542_v40 }
 0x331   :  { %v530_v11 = vadd.f32 %v529_v55, %v528_v45  ;;  %v521_v16 = vadd.f32 %v520_v56, %v519_v41  ;;  %v494_v25 = vmax.f32 %v492_v19, %v493_v59  ;;  %v485_v12 = vmax.f32 %v483_v2, %v484_v60 }
 0x332   :  { %v500_v57 = vrot.slane %v499_v4, 2  ;;  %v536_v20 = vrot.slane %v535_v51, 2  ;;  %v545_v58 = vrot.slane %v544_v54, 2  ;;  %v509_v21 = vrot.slane %v508_v49, 2 }
 0x333   :  { %v551_v29 = vmul.f32 0.03125, %v530_v11  ;;  %v550_v33 = vmul.f32 0.03125, %v521_v16 }
 0x334   :  { %v537_v61 = vadd.f32 %v536_v20, %v535_v51  ;;  %v510_v62 = vmax.f32 %v508_v49, %v509_v21  ;;  %v501_v63 = vmax.f32 %v499_v4, %v500_v57  ;;  %v546_v7 = vadd.f32 %v545_v58, %v544_v54 }
 0x336   :  { %v511_v17 = vrot.slane %v510_v62, 1  ;;  %v502_v22 = vrot.slane %v501_v63, 1  ;;  %v547_v23 = vrot.slane %v546_v7, 1  ;;  %v538_v24 = vrot.slane %v537_v61, 1 }
 0x338   :  { %v512_v26 = vmax.f32 %v510_v62, %v511_v17  ;;  %v503_v27 = vmax.f32 %v501_v63, %v502_v22  ;;  %v548_v13 = vadd.f32 %v547_v23, %v546_v7  ;;  %v539_v28 = vadd.f32 %v538_v24, %v537_v61 }
 0x33a   :  { %v559_v34 = vsel %vm187_vm4, %v512_v26, %v494_v25  ;;  %v558_v35 = vsel %vm187_vm4, %v503_v27, %v485_v12  ;;  %v553_v36 = vmul.f32 0.03125, %v548_v13  ;;  %v552_v37 = vmul.f32 0.03125, %v539_v28 }
 0x33b   :  { %762 = vmatprep.mubr.f32.mxu0 %v559_v34  ;;  %v878_v28 = vstv %s1599_s6  ;;  %v882_v34 = vstv %s1600_s7  ;;  %s1265_s6 = smov [#allocation9]  }
 0x33c   :  { %763 = vmatmul.mubr.f32.vlgmr.msra.gmra.mrb[2].mxu0 %v558_v35  ;;  %v567_v38 = vsel %vm187_vm4, %v553_v36, %v551_v29  ;;  %v566_v39 = vsel %vm187_vm4, %v552_v37, %v550_v33  ;;  %s979_s7 = sshll.u32 %s1265_s6, 4  ;;  %s980_s7 = int_to_ptr.vmem [resolvable:$true] %s979_s7 }
 0x33d   :  { %833 = vmatprep.mubr.f32.mxu1 %v567_v38  ;;  %s1229_s25 = scalar_lea.vmem %s980_s7, 2048  ;;  %p1234_p3 = scmp.lt.s32.totalorder %s980_s7, %s980_s7 }
 0x33e   :  { %834 = vmatmul.mubr.f32.vlgmr.msra.gmra.mrb[2].mxu1 %v566_v39  ;;  %p1230_p2 = scmp.ne.s32.totalorder %s980_s7, %s1229_s25  ;;  %p1235_p4 = scmp.lt.s32.totalorder %s1229_s25, %s1229_s25 }
 0x340   :  { %p1236_p5 = por %p1235_p4, %p1234_p3 }
 0x342   :  { %p1237_p6 = pnand %p1236_p5, %p1230_p2 }
 0x40f   :  { %v764_v40 = vpop.f32.mrb[2].mxu0 }
 0x410   :  { %v766_v41 = vpop.f32.mrb[3].mxu0 }
 0x411   :  { %v835_v45 = vpop.f32.mrb[2].mxu1 }
 0x412   :  { %v836_v46 = vadd.f32 %v835_v45, %v764_v40  ;;  %v837_v18 = vpop.f32.mrb[3].mxu1 }
 0x413   :  { %v838_v8 = vadd.f32 %v837_v18, %v766_v41 }
 0x414   :  { %v840_v9 = vsel %vm239_vm6, %v836_v46, 0.0 }
 0x415   :  { %v841_v19 = vsel %vm239_vm6, %v838_v8, 0.0 }
 0x416   :  { %v842_v2 = vadd.f32 %v841_v19, %v840_v9 }
 0x418   :  { %843 = vadd.xlane.f32.xlu0 %v842_v2 }
 0x4a5   :  { %v844_v4 = vpop.xlane.xlu0 %843 }
 0x4a6   :  { %v845_v49 = vrot.slane %v844_v4, 4 }
 0x4a8   :  { %v846_v51 = vadd.f32 %v845_v49, %v844_v4 }
 0x4aa   :  { %v847_v54 = vrot.slane %v846_v51, 2 }
 0x4ac   :  { %v848_v55 = vadd.f32 %v847_v54, %v846_v51 }
 0x4ae   :  { %v849_v56 = vrot.slane %v848_v55, 1 }
 0x4b0   :  { %v850_v57 = vadd.f32 %v849_v56, %v848_v55 }
 0x4b2   :  { %1158 = vpush %v850_v57 }
 0x4e3   :  { %s1159_s4 = spop %1158 }
 0x4e4   :  { %v852_v20 = vstv %s1159_s4 }
 0x4e5   :  { %v854_v58 = vmul.f32 0.001953125, %v852_v20 }
 0x4e7   :  { %v855_v21 = vsub.f32 %v836_v46, %v854_v58  ;;  %v856_v59 = vsub.f32 %v838_v8, %v854_v58  ;;  %v1264_v8 = vmov 1966171168  }
 0x4e8   :  { %v901_v9 = vunpack.c.l.s4 %v1264_v8 }
 0x4e9   :  { %v857_v60 = vmul.f32 %v855_v21, %v855_v21  ;;  %v858_v61 = vmul.f32 %v856_v59, %v856_v59 }
 0x4ea   :  { %v902_v19 = vunpack.c.0.s8 %v901_v9 }
 0x4eb   :  { %v859_v62 = vsel %vm239_vm6, %v857_v60, 0.0  ;;  %v860_v63 = vsel %vm239_vm6, %v858_v61, 0.0 }
 0x4ec   :  { %v861_v7 = vadd.f32 %v860_v63, %v859_v62  ;;  %v905_v4 = vsub.s32 %v902_v19, %v1417_v50 }
 0x4ee   :  { %862 = vadd.xlane.f32.xlu1 %v861_v7 }
 0x57b   :  { %v863_v11 = vpop.xlane.xlu1 %862 }
 0x57c   :  { %v864_v16 = vrot.slane %v863_v11, 4 }
 0x57e   :  { %v865_v17 = vadd.f32 %v864_v16, %v863_v11 }
 0x580   :  { %v866_v22 = vrot.slane %v865_v17, 2 }
 0x582   :  { %v867_v23 = vadd.f32 %v866_v22, %v865_v17 }
 0x584   :  { %v868_v24 = vrot.slane %v867_v23, 1 }
 0x586   :  { %v869_v25 = vadd.f32 %v868_v24, %v867_v23 }
 0x588   :  { %1160 = vpush %v869_v25 }
 0x5b9   :  { %s1161_s20 = spop %1160 }
 0x5ba   :  { %v871_v12 = vstv %s1161_s20 }
 0x5bb   :  { %v872_v26 = vmul.f32 0.001953125, %v871_v12 }
 0x5bd   :  { %v873_v27 = vadd.f32 1e-05, %v872_v26 }
 0x5bf   :  { %1175 = vrsqrt.f32 %v873_v27 }
 0x5c9   :  { %v1176_v13 = vpop.eup %1175 }
 0x5ca   :  { %v875_v29 = vmul.f32 %v1176_v13, %v855_v21  ;;  %v876_v33 = vmul.f32 %v1176_v13, %v856_v59 }
 0x5cc   :  { %v879_v35 = vmul.f32 %v878_v28, %v875_v29  ;;  %v880_v36 = vmul.f32 %v878_v28, %v876_v33 }
 0x5ce   :  { %v883_v37 = vadd.f32 %v882_v34, %v879_v35  ;;  %v884_v38 = vadd.f32 %v882_v34, %v880_v36 }
 0x5d0   :  { %v997_v39 = vmul.f32 -1.442695, %v883_v37  ;;  %v998_v40 = vmul.f32 -1.442695, %v884_v38 }
 0x5d2   :  { %1177 = vpow2.f32 %v997_v39 }
 0x5d3   :  { %1179 = vpow2.f32 %v998_v40 }
 0x5dc   :  { %v1178_v41 = vpop.eup %1177 }
 0x5dd   :  { %v1180_v45 = vpop.eup %1179  ;;  %v891_v46 = vadd.f32 1.0, %v1178_v41 }
 0x5de   :  { %v892_v18 = vadd.f32 1.0, %v1180_v45 }
 0x5df   :  { %1181 = vrcp.f32 %v891_v46 }
 0x5e0   :  { %1183 = vrcp.f32 %v892_v18 }
 0x5e9   :  { %v1182_v2 = vpop.eup %1181 }
 0x5ea   :  { %v1184_v49 = vpop.eup %1183 }
 0x5eb   :  { %v899_v51 = vcombine.low %v1182_v2, %v1184_v49 }
 0x5ed   :  { %v906_v54 = vrot.slane %v899_v51, %v905_v4 }
 0x5ef   :  { %v907_v55 = vcombine.high %v906_v54, %v906_v54  ;;  %v914_v56 = vrot.slane %v906_v54, %v905_v4 }
 0x5f1   :  { %v921_v57 = vrot.slane %v907_v55, %v905_v4  ;;  %v925_v20 = vrot.slane %v914_v56, %v1449_v3  ;;  %v929_v58 = vrot.slane %v914_v56, %v1454_v10 }
 0x5f3   :  { %v933_v21 = vrot.slane %v921_v57, %v1449_v3  ;;  %v937_v59 = vrot.slane %v921_v57, %v1454_v10  ;;  %v942_v60 = vmul.f32 %v925_v20, %v1470_v31  ;;  %v943_v61 = vmul.f32 %v929_v58, %v1473_v44 }
 0x5f4   :  { %v944_v50 = vmul.f32 %v925_v20, %v1464_v42  ;;  %v945_v62 = vmul.f32 %v929_v58, %v1467_v43  ;;  %v946_v63 = vmul.f32 %v925_v20, %v1476_v47  ;;  %v947_v7 = vmul.f32 %v929_v58, %v1479_v48 }
 0x5f5   :  { %v948_v11 = vmul.f32 %v925_v20, %v1496_v52  ;;  %v949_v3 = vmul.f32 %v929_v58, %v1499_v53  ;;  %v950_v10 = vmul.f32 %v933_v21, %v1506_v5  ;;  %v951_v31 = vmul.f32 %v937_v59, %v1509_v6  ;;  %958 = vst [vmem:[#allocation9] sm:$0xff] %v942_v60 }
 0x5f6   :  { %959 = vst [vmem:[#allocation9 + $0x8] sm:$0xff] %v943_v61  ;;  %v952_v42 = vmul.f32 %v933_v21, %v1490_v14  ;;  %v953_v43 = vmul.f32 %v937_v59, %v1493_v15  ;;  %v954_v44 = vmul.f32 %v933_v21, %v1520_v0  ;;  %v955_v47 = vmul.f32 %v937_v59, %v1523_v1 }
 0x5f7   :  { %960 = vst [vmem:[#allocation9 + $0x10] sm:$0xff] %v944_v50  ;;  %961 = vst [vmem:[#allocation9 + $0x18] sm:$0xff] %v945_v62  ;;  %v956_v48 = vmul.f32 %v933_v21, %v1534_v30  ;;  %v957_v52 = vmul.f32 %v937_v59, %v1537_v32 }
 0x5f8   :  { %962 = vst [vmem:[#allocation9 + $0x20] sm:$0xff] %v946_v63  ;;  %963 = vst [vmem:[#allocation9 + $0x28] sm:$0xff] %v947_v7 }
 0x5f9   :  { %964 = vst [vmem:[#allocation9 + $0x30] sm:$0xff] %v948_v11  ;;  %965 = vst [vmem:[#allocation9 + $0x38] sm:$0xff] %v949_v3 }
 0x5fa   :  { %966 = vst [vmem:[#allocation9 + $0x40] sm:$0xff] %v950_v10  ;;  %967 = vst [vmem:[#allocation9 + $0x48] sm:$0xff] %v951_v31 }
 0x5fb   :  { %968 = vst [vmem:[#allocation9 + $0x50] sm:$0xff] %v952_v42  ;;  %969 = vst [vmem:[#allocation9 + $0x58] sm:$0xff] %v953_v43 }
 0x5fc   :  { %970 = vst [vmem:[#allocation9 + $0x60] sm:$0xff] %v954_v44  ;;  %971 = vst [vmem:[#allocation9 + $0x68] sm:$0xff] %v955_v47 }
 0x5fd   :  { %972 = vst [vmem:[#allocation9 + $0x70] sm:$0xff] %v956_v48  ;;  %973 = vst [vmem:[#allocation9 + $0x78] sm:$0xff] %v957_v52 }
 0x5fe   :  { %1240 = shalt.err (!%p1237_p6)
}
 0x5ff   :  { %s1241_s29 = scalar_lea.hbm %s1601_s8, 2048 }
 0x600   :  { %p1242_p7 = scmp.ne.s32.totalorder %s1601_s8, %s1241_s29  ;;  %p1245_p8 = scmp.lt.u32.totalorder %s1241_s29, %s1601_s8 }
 0x602   :  { %p1247_p9 = pnand %p1245_p8, %p1242_p7 }
 0x604   :  { %1250 = shalt.err (!%p1247_p9)
}
 0x605   :  { %985 = dma.vmem_to_hbm [thread:$0]  %s980_s7, 2048, %s1601_s8, [#allocation6], %s1258_s15, %s1258_s15, %s1259_s16  }
 0x606   :  { %1255 = dma.done.wait [#allocation6], 2048  }
 0x607   :  { %1256 = vsyncadd [#allocation6], 4294965248 }
 0x608   :  { %989 = vsyncpa [#allocation5], 1 }
 0x609   :  { %990 = vsyncpa [#allocation8], 1 }
 0x60a   :  { %991 = vsyncpa [#allocation6], 1 }

</bundles_post_ra>
